<compile_context>
chip_gen: v7x
topology: tpu7x:2x2x1
jax: 0.10.0
libtpu: 0.0.40
codegen_flags: <defaults>
</compile_context>

<pallas_src>
import jax
import jax.numpy as jnp
from jax import lax
from jax.experimental import pallas as pl
from jax.experimental.pallas import tpu as pltpu


def _lookup_kernel(rc_ref, row_w_ref, col_w_ref, out_ref):
    n_rows, _ = row_w_ref.shape
    n_cols, _ = col_w_ref.shape
    tb = rc_ref.shape[1]

    rows = rc_ref[0:1, :]                      # (1, tb) int32, batch on lanes
    cols = rc_ref[1:2, :]                      # (1, tb) int32, batch on lanes

    # M^T[j, i] = sum_k col_W[j, k] * row_W[i, k] -- fused per-step recompute
    # (tiny, lives entirely in MXU slack; no host transpose needed).
    mt = lax.dot_general(col_w_ref[...], row_w_ref[...],
                         dimension_numbers=(((1,), (1,)), ((), ())),
                         preferred_element_type=jnp.float32)   # (n_cols, n_rows)

    # Row gather, batch on lanes: R[j, b] = M[rows[b], j].
    # One-hot is (n_rows, tb) so the MXU output is lane-dense (n_cols, tb).
    row_oh = (lax.broadcasted_iota(jnp.int32, (n_rows, tb), 0)
              == rows).astype(jnp.float32)                     # (n_rows, tb)
    r = jnp.dot(mt, row_oh, preferred_element_type=jnp.float32)  # (n_cols, tb)

    # Column select + sublane reduce -> lane-dense (1, tb) predictions.
    col_sel = lax.broadcasted_iota(jnp.int32, (n_cols, tb), 0) == cols
    out_ref[...] = jnp.sum(jnp.where(col_sel, r, 0.0), axis=0, keepdims=True)


def base_imputer_forward(locs, row_w, col_w, *, tile_b=512):
    """Pallas forward: pred[b] = sum_k row_w[locs[b,0],k] * col_w[locs[b,1],k]."""
    assert tile_b % 128 == 0, "tile_b must keep the lane dimension 128-dense"
    B = locs.shape[0]
    n_rows, k = row_w.shape
    n_cols, k2 = col_w.shape
    assert k == k2, "row and column factor dims must match for the dot-product forward"

    row_w = row_w.astype(jnp.float32)
    col_w = col_w.astype(jnp.float32)
    locs = locs.astype(jnp.int32)

    # ---- Layout plumbing: one lane-dense (2, b_pad) index slab. -------------
    b_pad = ((B + tile_b - 1) // tile_b) * tile_b
    pad = b_pad - B
    rc = jnp.pad(locs.T, ((0, 0), (0, pad)))       # (2, b_pad); pad with index 0

    num_tiles = b_pad // tile_b

    # ---- Fused lookup kernel over a multi-step "parallel" grid. -------------
    out = pl.pallas_call(
        _lookup_kernel,
        out_shape=jax.ShapeDtypeStruct((1, b_pad), jnp.float32),
        grid_spec=pltpu.PrefetchScalarGridSpec(
            num_scalar_prefetch=0,
            grid=(num_tiles,),
            in_specs=[
                pl.BlockSpec((2, tile_b), lambda i: (0, i)),        # packed rows/cols
                pl.BlockSpec((n_rows, k), lambda i: (0, 0)),        # row_W (grid-invariant)
                pl.BlockSpec((n_cols, k), lambda i: (0, 0)),        # col_W (grid-invariant)
            ],
            out_specs=pl.BlockSpec((1, tile_b), lambda i: (0, i)),  # lane-dense slab
        ),
        compiler_params=pltpu.CompilerParams(
            dimension_semantics=("parallel",)),
    )(rc, row_w, col_w)

    return out[0, :B]


if __name__ == "__main__":
    # Module hyper-parameters (small, consistent with BaseImputer.__init__):
    n_rows, n_cols = 32, 24
    n_row_factors = n_col_factors = 8
    non_negative = True
    batch_size = 1000          # padded to 1024 inside the wrapper -> 2 grid steps

    key = jax.random.PRNGKey(0)
    k_row, k_col, k_r, k_c = jax.random.split(key, 4)

    # torch.nn.Embedding default init ~ N(0, 1); abs() if non_negative.
    row_w = jax.random.normal(k_row, (n_rows, n_row_factors), dtype=jnp.float32)
    col_w = jax.random.normal(k_col, (n_cols, n_col_factors), dtype=jnp.float32)
    if non_negative:
        row_w = jnp.abs(row_w)
        col_w = jnp.abs(col_w)

    # locs: (batch_size, 2) matrix indices, as produced by FactorizationDataLoader.
    rows = jax.random.randint(k_r, (batch_size,), 0, n_rows, dtype=jnp.int32)
    cols = jax.random.randint(k_c, (batch_size,), 0, n_cols, dtype=jnp.int32)
    locs = jnp.stack([rows, cols], axis=1)

    pred = base_imputer_forward(locs, row_w, col_w, tile_b=512)
    pred = jax.block_until_ready(pred)

    # Pure-JAX reference of the forward semantics.
    ref = jnp.sum(row_w[locs[:, 0]] * col_w[locs[:, 1]], axis=-1)
    assert pred.shape == (batch_size,)
    assert jnp.allclose(pred, ref, atol=1e-4, rtol=1e-4), \
        float(jnp.max(jnp.abs(pred - ref)))

    # TODO(synk): BaseImputer.forward itself raises NotImplementedError; the
    # standard NMF-style dot-product forward used by its subclasses is what is
    # implemented here. fit/transform/optimizer/early-stopping logic is
    # host-side training glue and not a kernel.
    print("KERNEL_OK")
</pallas_src>

<mosaic_0001>
module attributes {stable_mosaic.version = 11 : i64} {
  func.func @_lookup_kernel(%arg0: i32, %arg1: memref<2x512xi32, #tpu.memory_space<vmem>>, %arg2: memref<32x8xf32, #tpu.memory_space<vmem>>, %arg3: memref<24x8xf32, #tpu.memory_space<vmem>>, %arg4: memref<1x512xf32, #tpu.memory_space<vmem>>) attributes {dimension_semantics = [#tpu.dimension_semantics<parallel>], iteration_bounds = array<i64: 2>, scalar_prefetch = 0 : i64, scratch_operands = 0 : i64, tpu.core_type = #tpu.core_type<tc>, window_params = [{transform_indices = @transform_0, window_bounds = array<i64: 2, 512>}, {pipeline_mode = #tpu.pipeline_mode<synchronous>, transform_indices = @transform_1, window_bounds = array<i64: 32, 8>}, {pipeline_mode = #tpu.pipeline_mode<synchronous>, transform_indices = @transform_2, window_bounds = array<i64: 24, 8>}, {transform_indices = @transform_3, window_bounds = array<i64: 1, 512>}]} {
    %c0 = arith.constant 0 : index
    %c0_0 = arith.constant 0 : index
    %0 = vector.load %arg1[%c0, %c0_0] : memref<2x512xi32, #tpu.memory_space<vmem>>, vector<1x512xi32>
    %c1 = arith.constant 1 : index
    %c0_1 = arith.constant 0 : index
    %1 = vector.load %arg1[%c1, %c0_1] : memref<2x512xi32, #tpu.memory_space<vmem>>, vector<1x512xi32>
    %c0_2 = arith.constant 0 : index
    %c0_3 = arith.constant 0 : index
    %2 = vector.load %arg3[%c0_2, %c0_3] : memref<24x8xf32, #tpu.memory_space<vmem>>, vector<24x8xf32>
    %c0_4 = arith.constant 0 : index
    %c0_5 = arith.constant 0 : index
    %3 = vector.load %arg2[%c0_4, %c0_5] : memref<32x8xf32, #tpu.memory_space<vmem>>, vector<32x8xf32>
    %cst = arith.constant dense<0.000000e+00> : vector<24x32xf32>
    %4 = tpu.matmul %2, %3, %cst {dimension_numbers = #tpu.dot_dimension_numbers<[1], [1], [0], [0], [0, 0, 1, 0], [], []>} : vector<24x8xf32>, vector<32x8xf32>, vector<24x32xf32> -> vector<24x32xf32>
    %5 = tpu.iota {dimensions = array<i32: 0>} : vector<32x512xi32>
    %6 = vector.broadcast %0 : vector<1x512xi32> to vector<32x512xi32>
    %7 = arith.cmpi eq, %5, %6 : vector<32x512xi32>
    %8 = arith.extui %7 : vector<32x512xi1> to vector<32x512xi32>
    %9 = arith.sitofp %8 : vector<32x512xi32> to vector<32x512xf32>
    %cst_6 = arith.constant dense<0.000000e+00> : vector<24x512xf32>
    %10 = tpu.matmul %4, %9, %cst_6 {dimension_numbers = #tpu.dot_dimension_numbers<[1], [0], [0], [1], [0, 0, 1, 1], [], []>} : vector<24x32xf32>, vector<32x512xf32>, vector<24x512xf32> -> vector<24x512xf32>
    %11 = tpu.iota {dimensions = array<i32: 0>} : vector<24x512xi32>
    %12 = vector.broadcast %1 : vector<1x512xi32> to vector<24x512xi32>
    %13 = arith.cmpi eq, %11, %12 : vector<24x512xi32>
    %cst_7 = arith.constant 0.000000e+00 : f32
    %14 = vector.broadcast %cst_7 : f32 to vector<24x512xf32>
    %15 = arith.select %13, %10, %14 : vector<24x512xi1>, vector<24x512xf32>
    %cst_8 = arith.constant dense<0.000000e+00> : vector<512xf32>
    %16 = vector.multi_reduction <add>, %15, %cst_8 [0] : vector<24x512xf32> to vector<512xf32>
    %17 = vector.shape_cast %16 : vector<512xf32> to vector<1x512xf32>
    %c0_9 = arith.constant 0 : index
    %c0_10 = arith.constant 0 : index
    %18 = vector.load %arg4[%c0_9, %c0_10] : memref<1x512xf32, #tpu.memory_space<vmem>>, vector<1x512xf32>
    tpu.vector_store %arg4[%c0_9, %c0_10], %17 {strides = array<i32>} : memref<1x512xf32, #tpu.memory_space<vmem>>, vector<1x512xf32>,
    return
  }
  func.func @transform_0(%arg0: i32) -> (i32, i32) {
    %c0_i32 = arith.constant 0 : i32
    %c0_i32_0 = arith.constant 0 : i32
    return %c0_i32, %arg0 : i32, i32
  }
  func.func @transform_1(%arg0: i32) -> (i32, i32) {
    %c0_i32 = arith.constant 0 : i32
    %c0_i32_0 = arith.constant 0 : i32
    %c0_i32_1 = arith.constant 0 : i32
    return %c0_i32, %c0_i32_0 : i32, i32
  }
  func.func @transform_2(%arg0: i32) -> (i32, i32) {
    %c0_i32 = arith.constant 0 : i32
    %c0_i32_0 = arith.constant 0 : i32
    %c0_i32_1 = arith.constant 0 : i32
    return %c0_i32, %c0_i32_0 : i32, i32
  }
  func.func @transform_3(%arg0: i32) -> (i32, i32) {
    %c0_i32 = arith.constant 0 : i32
    %c0_i32_0 = arith.constant 0 : i32
    return %c0_i32, %arg0 : i32, i32
  }
}

</mosaic_0001>

<bundles_post_ra>
// kernel: tpu_custom_call.1
= control target key start
LH: loop header
LB: loop body
LE: loop exit
PB: predicated region body
PF: predicated region fallthrough
CT: control target
= control target key end

     0   :  { %8 = vsyncpa [#allocation3], 0  ;;  %s1157_s0 = inlined_call_operand.vmem [shape: s32[2,1024], index: 0, kind: input, shape index: {}]   ;;  %s1158_s1 = inlined_call_operand.vmem [shape: f32[32,8], index: 1, kind: input, shape index: {}]   ;;  %s1159_s2 = inlined_call_operand.vmem [shape: f32[24,8], index: 2, kind: input, shape index: {}]   ;;  %s1160_s3 = inlined_call_operand.hbm [shape: f32[1,1024], index: 3, kind: output, shape index: {}]  }
   0x1   :  { %10 = vsyncpa [#allocation3 + $0x1], 0  ;;  %s950_s12 = smov 0   ;;  %s952_s13 = smov 0  }
   0x2   :  { %s954_s14 = smov 0   ;;  %s956_s15 = smov 0  }
   0x3 LB: > { %s971_s16 = sadd.s32 4294967295, %s922_s15   ;;  %s709_s17 = sadd.s32 4294967294, %s922_s15   ;;  %s922_s15 = sphi %s956_s15, %s1168_s15   ;;  %s918_s14 = sphi %s954_s14, %s1167_s14   ;;  %s914_s13 = sphi %s952_s13, %s1166_s13   ;;  %s910_s12 = sphi %s950_s12, %s1165_s12  }
   0x4   : > { %s975_s18 = sadd.s32 1, %s922_s15   ;;  %s91_s19 = sadd.s32 1, %s918_s14 }
   0x5   : > { %s88_s20 = ssub.s32 %s922_s15, %s975_s18  ;;  %p101_p0 = scmp.ne.s32.totalorder %s918_s14, %s914_s13 }
   0x6   : > { %p89_p1 = scmp.eq.s32.totalorder %s88_s20, 0  ;;  %p102_p2 = scmp.eq.s32.totalorder %s971_s16, 1 }
   0x7   : > { %p107_p3 = scmp.ne.s32.totalorder %s914_s13, %s910_s12  ;;  %p108_p4 = scmp.eq.s32.totalorder %s709_s17, 1 }
   0x8   : > { %s986_s21 = scalar_select %p89_p1, %s918_s14, %s91_s19  }
   0x9   : > { %p988_p5 = por %p102_p2, %p101_p0  ;;  %p992_p6 = por %p108_p4, %p107_p3 }
   0xa   : > { %p712_p7 = scmp.ge.s32.totalorder %s922_s15, 1  ;;  %p141_p8 = scmp.lt.s32.totalorder %s922_s15, 3 }
   0xc   : > { %p142_p9 = pnand %p712_p7, %p141_p8 }
   0xd   : > { %v178_v0 = vld [vmem:[%s1158_s1] sm:$0xff] (!%p142_p9)  ;;  %v179_v1 = vld [vmem:[%s1158_s1 + $0x8] sm:$0xff] (!%p142_p9)  ;;  %vm182_vm0 = vcmask (!%p142_p9), 64512   ;;  %v284_v2 = vlaneseq (!%p142_p9)  ;;  %v924_v3 = vmov (!%p142_p9), 0.0|0.0   ;;  %s714_s28 = sshll.u32 (!%p142_p9), %s971_s16, 2  ;;  %vm925_vm2 = vmmov (!%p142_p9), 0  }
   0xe   : > { %145 = sbr.rel (%p142_p9) target bundleno = 513 (0x201), region = 32  ;;  %792 = vmatprep.subr.bf16.mxu0 (!%p142_p9), %v924_v3  ;;  %v793_v4 = vpack.c.bf16 (!%p142_p9), %v179_v1, %v178_v0  ;;  %vm1006_vm1 = vmpackc.low (!%p142_p9), %vm182_vm0, %vm182_vm0  ;;  %v926_v6 = vmov (!%p142_p9), 0.0   ;;  %p166_p10 = scmp.lt.s32.totalorder (!%p142_p9), %s714_s28, 7  ;;  %v180_v8 = vld [vmem:[%s1158_s1 + $0x10] sm:$0xff] (!%p142_p9)  ;;  %v181_v9 = vld [vmem:[%s1158_s1 + $0x18] sm:$0xff] (!%p142_p9) }
   0xf   : > { %783 = vmatprep.mubr.msk.f32.mxu0 (!%p142_p9), %vm925_vm2, %v926_v6  ;;  %v1014_v7 = vshrl.u32 (!%p142_p9), %v284_v2, 7  ;;  %427 = vmatprep.mubr.f32.mxu1 (!%p142_p9), %v926_v6  ;;  %v797_v12 = vpack.c.bf16 (!%p142_p9), %v181_v9, %v180_v8  ;;  %v927_v19 = vmov (!%p142_p9), 1.0|1.0   ;;  %v175_v20 = vld [vmem:[%s1159_s2] sm:$0xff] (!%p142_p9)  ;;  %v176_v21 = vld [vmem:[%s1159_s2 + $0x8] sm:$0xff] (!%p142_p9)  ;;  %v177_v22 = vld [vmem:[%s1159_s2 + $0x10] sm:$0xff] (!%p142_p9) }
  0x10   : > { %795 = vmatpush3.bf16.xpose.msk.msra.mxu0 (!%p142_p9), %vm1006_vm1, %v793_v4  ;;  %s162_s25 = sand.u32 (!%p142_p9), 1, %s914_s13   ;;  %s767_s27 = sshll.u32 (!%p142_p9), %s971_s16, 6 }
  0x11   : > { %796 = vmatprep.subr.bf16.mxu0 (!%p142_p9), %v924_v3  ;;  %v295_v10 = vsub.s32 (!%p142_p9), 1, %v1014_v7  ;;  %v291_v11 = vsub.s32 (!%p142_p9), 0, %v1014_v7  ;;  %v1033_v13 = vadd.s32 (!%p142_p9), 8, %v1014_v7  ;;  %v1037_v15 = vadd.s32 (!%p142_p9), 16, %v1014_v7  ;;  %s713_s26 = sshll.u32 (!%p142_p9), %s162_s25, 2  ;;  %s1115_s5 = scalar_lea.hbm (!%p142_p9), %s1160_s3, %s767_s27 }
  0x12   : > { %v288_v16 = vadd.s32 (!%p142_p9), 24, %v1014_v7  ;;  %v303_v23 = vsub.s32 (!%p142_p9), 3, %v1014_v7  ;;  %v299_v25 = vsub.s32 (!%p142_p9), 2, %v1014_v7  ;;  %s929_s16 = smov (!%p142_p9), [#allocation2]  }
  0x13   : > { %s864_s8 = sshll.u32 (!%p142_p9), %s929_s16, 4  ;;  %s865_s8 = int_to_ptr.vmem [resolvable:$false] %s864_s8 }
  0x15   : > { %s1170_s28 = smov (!%p166_p10, %s714_s28), 7 }
  0x16   : > { %s715_s6 = sshll.u32 %s1170_s28, 1  ;;  %s164_s28 = scalar_lea.vmem [#allocation2], %s713_s26 }
  0x17   : > { %s1030_s9 = scalar_lea.vmem %s1157_s0, %s715_s6  ;;  %s650_s29 = sshll.u32 %s164_s28, 4  ;;  %s1117_s29 = int_to_ptr.vmem [resolvable:$true] %s650_s29 }
  0x18   : > { %v172_v14 = vld [vmem:[%s1030_s9] ss:$2 sm:$0xf]  ;;  %799 = vmatpush3.bf16.xpose.msk.msra.mxu0 %vm1006_vm1, %v797_v12  ;;  %v716_v33 = vld [vmem:[%s1030_s9 + $0x1] ss:$2 sm:$0xf]  ;;  %p867_p0 = scmp.lt.s32.totalorder %s1117_s29, %s865_s8 }
  0x19   : > { %v296_v17 = vrot.slane %v172_v14, %v295_v10  ;;  %v292_v18 = vrot.slane %v172_v14, %v291_v11  ;;  %v304_v24 = vrot.slane %v172_v14, %v303_v23  ;;  %v300_v26 = vrot.slane %v172_v14, %v299_v25  ;;  %s636_s6 = scalar_lea.sflag [#allocation3], %s162_s25  ;;  %s860_s7 = scalar_lea.vmem %s1117_s29, 64 }
  0x1a   : > { %v532_v34 = vrot.slane %v716_v33, %v291_v11  ;;  %v536_v35 = vrot.slane %v716_v33, %v295_v10  ;;  %v540_v51 = vrot.slane %v716_v33, %v299_v25  ;;  %v544_v53 = vrot.slane %v716_v33, %v303_v23  ;;  %p861_p11 = scmp.ne.s32.totalorder %s1117_s29, %s860_s7  ;;  %s866_s9 = scalar_lea.vmem %s865_s8, 128 }
  0x1b   : > { %vm306_vm3 = vcmp.eq.s32.totalorder %v1014_v7, %v296_v17  ;;  %vm310_vm4 = vcmp.eq.s32.totalorder %v1033_v13, %v296_v17  ;;  %vm305_vm5 = vcmp.eq.s32.totalorder %v1014_v7, %v292_v18  ;;  %vm309_vm6 = vcmp.eq.s32.totalorder %v1033_v13, %v292_v18  ;;  %p868_p1 = scmp.lt.s32.totalorder %s866_s9, %s860_s7 }
  0x1c   : > { %vm800_vm7 = vmpackc.low %vm310_vm4, %vm306_vm3  ;;  %vm314_vm8 = vcmp.eq.s32.totalorder %v1037_v15, %v296_v17  ;;  %vm318_vm9 = vcmp.eq.s32.totalorder %v288_v16, %v296_v17  ;;  %vm313_vm10 = vcmp.eq.s32.totalorder %v1037_v15, %v292_v18  ;;  %vm317_vm11 = vcmp.eq.s32.totalorder %v288_v16, %v292_v18  ;;  %p862_p12 = pnand %p861_p11, %p988_p5 }
  0x1d   : > { %801 = vmatprep.subr.msk.bf16.mxu1 %vm800_vm7, %v927_v19  ;;  %vm802_vm12 = vmpackc.low %vm309_vm6, %vm305_vm5  ;;  %vm308_vm15 = vcmp.eq.s32.totalorder %v1014_v7, %v304_v24  ;;  %vm312_vm1 = vcmp.eq.s32.totalorder %v1033_v13, %v304_v24  ;;  %vm311_vm4 = vcmp.eq.s32.totalorder %v1033_v13, %v300_v26  ;;  %vm320_vm5 = vcmp.eq.s32.totalorder %v288_v16, %v304_v24  ;;  %p869_p2 = por %p868_p1, %p867_p0 }
  0x1e   : > { %803 = vmatpush1.bf16.msk.msra.mxu1 %vm802_vm12, %v927_v19  ;;  %vm804_vm13 = vmpackc.low %vm318_vm9, %vm314_vm8  ;;  %vm353_vm6 = vcmask 261120   ;;  %vm315_vm9 = vcmp.eq.s32.totalorder %v1037_v15, %v300_v26  ;;  %vm545_vm12 = vcmp.eq.s32.totalorder %v1014_v7, %v532_v34  ;;  %v928_v25 = vmov 1966171168   ;;  %p863_p13 = pneg %p862_p12 }
  0x1f   : > { %805 = vmatprep.subr.msk.bf16.mxu1 %vm804_vm13, %v927_v19  ;;  %vm806_vm14 = vmpackc.low %vm317_vm11, %vm313_vm10  ;;  %784 = vmatmul.mubr.msk.f32.vlgmr.msra.gmra.mrb[0].mxu0 %vm182_vm0, %v175_v20  ;;  %vm319_vm10 = vcmp.eq.s32.totalorder %v288_v16, %v300_v26  ;;  %vm549_vm13 = vcmp.eq.s32.totalorder %v1033_v13, %v532_v34 }
  0x20   : > { %786 = vmatprep.mubr.msk.f32.mxu0 %vm925_vm2, %v926_v6  ;;  %vm808_vm3 = vmpackc.low %vm312_vm1, %vm308_vm15  ;;  %vm550_vm15 = vcmp.eq.s32.totalorder %v1033_v13, %v536_v35  ;;  %vm553_vm1 = vcmp.eq.s32.totalorder %v1037_v15, %v532_v34  ;;  %p870_p3 = pnand %p869_p2, %p863_p13 }
  0x21   : > { %vm814_vm11 = vmpackc.low %vm319_vm10, %vm315_vm9 }
  0x22   : > { %807 = vmatpush1.bf16.msk.msra.mxu1 %vm806_vm14, %v927_v19  ;;  %vm546_vm14 = vcmp.eq.s32.totalorder %v1014_v7, %v536_v35 }
  0x23   : > { %787 = vmatmul.mubr.msk.f32.gmra.mrb[2].mxu0 %vm182_vm0, %v176_v21  ;;  %809 = vmatprep.subr.msk.bf16.mxu1 %vm808_vm3, %v927_v19  ;;  %vm554_vm3 = vcmp.eq.s32.totalorder %v1037_v15, %v536_v35 }
  0x24   : > { %789 = vmatprep.mubr.msk.f32.mxu0 %vm925_vm2, %v926_v6  ;;  %vm307_vm2 = vcmp.eq.s32.totalorder %v1014_v7, %v300_v26  ;;  %v608_v26 = vunpack.c.l.s4 %v928_v25 }
  0x25   : > { %vm810_vm7 = vmpackc.low %vm311_vm4, %vm307_vm2  ;;  %vm547_vm2 = vcmp.eq.s32.totalorder %v1014_v7, %v540_v51  ;;  %vm551_vm4 = vcmp.eq.s32.totalorder %v1033_v13, %v540_v51 }
  0x27   : > { %790 = vmatmul.mubr.msk.f32.gmra.mrb[4].mxu0 %vm182_vm0, %v177_v22  ;;  %vm316_vm0 = vcmp.eq.s32.totalorder %v1037_v15, %v304_v24 }
  0x28   : > { %vm812_vm8 = vmpackc.low %vm320_vm5, %vm316_vm0  ;;  %vm548_vm0 = vcmp.eq.s32.totalorder %v1014_v7, %v544_v53  ;;  %vm552_vm5 = vcmp.eq.s32.totalorder %v1033_v13, %v544_v53 }
  0xf2   : > { %v270_v27 = vpop.f32.mrb[0].mxu0 }
  0xf3   : > { %v785_v28 = vpop.f32.mrb[1].mxu0  ;;  %748 = vmatmul.mubr.msk.f32.vlgmr.msra.gmra.mrb[0].mxu1 %vm353_vm6, %v270_v27 }
  0xf4   : > { %811 = vmatpush1.bf16.msk.msra.mxu1 %vm810_vm7, %v927_v19  ;;  %433 = vmatprep.mubr.f32.mxu1 %v926_v6  ;;  %vm556_vm7 = vcmp.eq.s32.totalorder %v1037_v15, %v544_v53 }
  0xf5   : > { %813 = vmatprep.subr.msk.bf16.mxu1 %vm812_vm8, %v927_v19  ;;  %vm632_vm8 = vcmp.lt.s32.totalorder %v284_v2, 512 }
  0xf6   : > { %v275_v29 = vpop.f32.mrb[2].mxu0 }
  0xf7   : > { %v788_v30 = vpop.f32.mrb[3].mxu0  ;;  %749 = vmatmul.mubr.msk.f32.gmra.mrb[2].mxu1 %vm353_vm6, %v275_v29 }
  0xf8   : > { %815 = vmatpush1.bf16.msk.msra.mxu1 %vm814_vm11, %v927_v19  ;;  %439 = vmatprep.mubr.f32.mxu1 %v926_v6  ;;  %v609_v30 = vunpack.c.0.s8 %v608_v26 }
  0xfa   : > { %v280_v31 = vpop.f32.mrb[4].mxu0  ;;  %v612_v35 = vsub.s32 %v609_v30, %v1014_v7 }
  0xfb   : > { %v791_v32 = vpop.f32.mrb[5].mxu0  ;;  %750 = vmatmul.mubr.msk.f32.gmra.mrb[4].mxu1 %vm353_vm6, %v280_v31 }
  0xfc   : > { %510 = vmatprep.mubr.f32.mxu1 %v926_v6 }
  0xff   : > { %759 = vmatmul.mubr.msk.f32.vlgmr.msra.gmra.mrb[6].mxu1 %vm353_vm6, %v270_v27 }
 0x100   : > { %516 = vmatprep.mubr.f32.mxu1 %v926_v6 }
 0x103   : > { %760 = vmatmul.mubr.msk.f32.gmra.mrb[8].mxu1 %vm353_vm6, %v275_v29 }
 0x104   : > { %522 = vmatprep.mubr.f32.mxu1 %v926_v6 }
 0x107   : > { %761 = vmatmul.mubr.msk.f32.gmra.mrb[10].mxu1 %vm353_vm6, %v280_v31  ;;  %vm555_vm6 = vcmp.eq.s32.totalorder %v1037_v15, %v540_v51 }
 0x1c6   : > { %v429_v36 = vpop.f32.mrb[0].mxu1 }
 0x1c7   : > { %v431_v37 = vpop.f32.mrb[1].mxu1  ;;  %v557_v39 = vsel %vm545_vm12, %v429_v36, 0.0 }
 0x1c8   : > { %v558_v42 = vsel %vm546_vm14, %v431_v37, 0.0 }
 0x1ca   : > { %v435_v38 = vpop.f32.mrb[2].mxu1 }
 0x1cb   : > { %v561_v40 = vsel %vm549_vm13, %v435_v38, 0.0  ;;  %v437_v41 = vpop.f32.mrb[3].mxu1 }
 0x1cc   : > { %v569_v43 = vadd.f32 %v561_v40, %v557_v39  ;;  %v562_v44 = vsel %vm550_vm15, %v437_v41, 0.0 }
 0x1cd   : > { %v577_v45 = vadd.f32 %v562_v44, %v558_v42 }
 0x1ce   : > { %v441_v46 = vpop.f32.mrb[4].mxu1 }
 0x1cf   : > { %v565_v47 = vsel %vm553_vm1, %v441_v46, 0.0  ;;  %v443_v48 = vpop.f32.mrb[5].mxu1 }
 0x1d0   : > { %v570_v49 = vadd.f32 %v569_v43, %v565_v47  ;;  %v566_v50 = vsel %vm554_vm3, %v443_v48, 0.0 }
 0x1d1   : > { %v578_v52 = vadd.f32 %v577_v45, %v566_v50 }
 0x1d2   : > { %v571_v54 = vrot.slane %v570_v49, 4  ;;  %v512_v55 = vpop.f32.mrb[6].mxu1 }
 0x1d3   : > { %v579_v56 = vrot.slane %v578_v52, 4  ;;  %v514_v57 = vpop.f32.mrb[7].mxu1  ;;  %v559_v63 = vsel %vm547_vm2, %v512_v55, 0.0 }
 0x1d4   : > { %v572_v58 = vadd.f32 %v571_v54, %v570_v49  ;;  %v560_v4 = vsel %vm548_vm0, %v514_v57, 0.0 }
 0x1d5   : > { %v580_v59 = vadd.f32 %v579_v56, %v578_v52 }
 0x1d6   : > { %v573_v60 = vrot.slane %v572_v58, 2  ;;  %v518_v61 = vpop.f32.mrb[8].mxu1 }
 0x1d7   : > { %v581_v62 = vrot.slane %v580_v59, 2  ;;  %v563_v0 = vsel %vm551_vm4, %v518_v61, 0.0  ;;  %v520_v1 = vpop.f32.mrb[9].mxu1 }
 0x1d8   : > { %v574_v3 = vadd.f32 %v573_v60, %v572_v58  ;;  %v585_v5 = vadd.f32 %v563_v0, %v559_v63  ;;  %v564_v6 = vsel %vm552_vm5, %v520_v1, 0.0 }
 0x1d9   : > { %v582_v8 = vadd.f32 %v581_v62, %v580_v59  ;;  %v593_v9 = vadd.f32 %v564_v6, %v560_v4 }
 0x1da   : > { %v575_v10 = vrot.slane %v574_v3, 1  ;;  %v524_v11 = vpop.f32.mrb[10].mxu1 }
 0x1db   : > { %v583_v12 = vrot.slane %v582_v8, 1  ;;  %v567_v13 = vsel %vm555_vm6, %v524_v11, 0.0  ;;  %v526_v14 = vpop.f32.mrb[11].mxu1 }
 0x1dc   : > { %v576_v16 = vadd.f32 %v575_v10, %v574_v3  ;;  %v586_v17 = vadd.f32 %v585_v5, %v567_v13  ;;  %v568_v18 = vsel %vm556_vm7, %v526_v14, 0.0 }
 0x1dd   : > { %v584_v19 = vadd.f32 %v583_v12, %v582_v8  ;;  %v594_v20 = vadd.f32 %v593_v9, %v568_v18 }
 0x1de   : > { %v587_v21 = vrot.slane %v586_v17, 4 }
 0x1df   : > { %v605_v22 = vcombine.low %v576_v16, %v584_v19  ;;  %v595_v23 = vrot.slane %v594_v20, 4 }
 0x1e0   : > { %v588_v24 = vadd.f32 %v587_v21, %v586_v17 }
 0x1e1   : > { %v596_v27 = vadd.f32 %v595_v23, %v594_v20  ;;  %v613_v38 = vrot.slane %v605_v22, %v612_v35 }
 0x1e2   : > { %v589_v15 = vrot.slane %v588_v24, 2 }
 0x1e3   : > { %v597_v28 = vrot.slane %v596_v27, 2 }
 0x1e4   : > { %v590_v29 = vadd.f32 %v589_v15, %v588_v24 }
 0x1e5   : > { %v598_v31 = vadd.f32 %v597_v28, %v596_v27 }
 0x1e6   : > { %v591_v32 = vrot.slane %v590_v29, 1 }
 0x1e7   : > { %v599_v33 = vrot.slane %v598_v31, 1 }
 0x1e8   : > { %v592_v34 = vadd.f32 %v591_v32, %v590_v29 }
 0x1e9   : > { %v600_v36 = vadd.f32 %v599_v33, %v598_v31 }
 0x1eb   : > { %v606_v37 = vcombine.low %v592_v34, %v600_v36 }
 0x1ed   : > { %v620_v39 = vrot.slane %v606_v37, %v612_v35 }
 0x1ef   : > { %v621_v40 = vcombine.low %v613_v38, %v620_v39 }
 0x1f1   : > { %v628_v41 = vrot.slane %v621_v40, %v612_v35 }
 0x1f3   : > { %634 = vst.msk [vmem:[%s164_s28] sm:$0xf] %vm632_vm8, %v628_v41 }
 0x1f4   : > { %873 = shalt.err (!%p870_p3)
}
 0x1f5   : > { %s874_s10 = scalar_lea.hbm %s1115_s5, 64  ;;  %s878_s19 = scalar_lea.hbm %s1160_s3, 128 }
 0x1f6   : > { %p875_p4 = scmp.ne.s32.totalorder %s1115_s5, %s874_s10  ;;  %p879_p9 = scmp.lt.u32.totalorder %s1115_s5, %s1160_s3 }
 0x1f7   : > { %p880_p10 = scmp.lt.u32.totalorder %s878_s19, %s874_s10  ;;  %p882_p12 = scmp.lt.u32.totalorder %s874_s10, %s1115_s5 }
 0x1f8   : > { %p876_p7 = pnand %p875_p4, %p988_p5 }
 0x1f9   : > { %p881_p11 = por %p880_p10, %p879_p9 }
 0x1fa   : > { %p877_p8 = pneg %p876_p7 }
 0x1fb   : > { %p883_p13 = por %p882_p12, %p881_p11 }
 0x1fd   : > { %p884_p0 = pnand %p883_p13, %p877_p8 }
 0x1ff   : > { %887 = shalt.err (!%p884_p0)
}
 0x200   : > { %816 = dma.vmem_to_hbm [thread:$0]  (%p988_p5), %s1117_s29, 64, %s1115_s5, %s636_s6  }
 0x201 PF: > { %p822_p1 = scmp.ge.s32.totalorder %s922_s15, 2  ;;  %s662_s25 = sand.u32 1, %s910_s12  }
 0x202   : > { %s663_s26 = scalar_lea.sflag [#allocation3], %s662_s25 }
 0x203   : > { %p819_p2 = pnand %p822_p1, %p992_p6 }
 0x205   : > { %905 = dma.done.wait (!%p819_p2), %s663_s26, 64  }
 0x206   : > { %907 = vsyncadd (!%p819_p2), %s663_s26, 4294967232  ;;  %p13_p3 = scmp.ge.s32.totalorder %s975_s18, 4   ;;  %s1165_s12 = smov %s914_s13 }
 0x207   : > { %s1166_s13 = smov %s918_s14  ;;  %s1167_s14 = smov %s986_s21 }
 0x208   : > { %s1168_s15 = smov %s975_s18  ;;  %15 = sbr.rel (!%p13_p3) target bundleno = 3 (0x3), region = 68 }
 0x20f   :  { %668 = vsyncpa [#allocation3], 1 }
 0x210   :  { %670 = vsyncpa [#allocation3 + $0x1], 1 }

</bundles_post_ra>
